<compile_context>
chip_gen: v5e
topology: v5e:2x2
jax: 0.10.0
libtpu: 0.0.40
codegen_flags: <defaults>
</compile_context>

<pallas_src>
import functools

import jax
import jax.numpy as jnp
from jax import lax
from jax.experimental import pallas as pl
from jax.experimental.pallas import tpu as pltpu


def _round_up(v: int, m: int) -> int:
    return (v + m - 1) // m * m


def _triplet_center_cosine_kernel(x_ref, ct_ref, labels_ref, out_ref, *,
                                  margin: float, batch: int,
                                  num_classes: int, tile_b: int):
    x = x_ref[...]                        # (TILE_B, D_pad) bf16
    ct = ct_ref[...]                      # (D_pad, C_pad)  bf16 (resident)
    labels = labels_ref[...]              # (TILE_B, 1)     int32

    tb = x.shape[0]
    c_pad = ct.shape[1]

    # Cosine similarities on the MXU: bf16 operands, f32 accumulate.
    # Centers are pre-normalized & pre-transposed -> no in-kernel transpose.
    sims = jnp.dot(x, ct, preferred_element_type=jnp.float32)   # (TILE_B, C_pad)
    d = 1.0 - sims                                              # cosine distance

    class_ids = lax.broadcasted_iota(jnp.int32, (tb, c_pad), dimension=1)
    is_pos = class_ids == labels                 # broadcast against (TILE_B, 1)
    pad_col = class_ids >= num_classes           # explicit padded-class mask

    # pos[i] = d[i, labels[i]]  (mask + sum; no dynamic gather on TPU)
    pos = jnp.sum(jnp.where(is_pos, d, 0.0), axis=1, keepdims=True)     # (TILE_B,1)
    # neg[i] = min over all other (real) classes
    neg = jnp.min(jnp.where(is_pos | pad_col, jnp.inf, d),
                  axis=1, keepdims=True)                                # (TILE_B,1)

    per_sample = jnp.maximum(pos + margin - neg, 0.0)                   # (TILE_B,1)

    # Zero out padded batch rows so the wrapper can just sum the output.
    row = lax.broadcasted_iota(jnp.int32, (tb, 1), dimension=0)
    global_row = pl.program_id(0) * tile_b + row
    per_sample = jnp.where(global_row < batch, per_sample, 0.0)

    out_ref[...] = per_sample


def triplet_center_cosine_loss(x, centers, labels, *, margin=1.0, tile_b=None):
    """x: (B, D) float (rows assumed L2-normalized), centers: (C, D) float,
    labels: (B,) int. Returns scalar float32 loss."""
    B, D = x.shape
    C, Dc = centers.shape
    assert D == Dc

    # ---- one-time XLA-side prep (HBM) --------------------------------------
    # L2-normalize centers in f32 (matches F.normalize(dim=1), eps clamp).
    c_n = centers.astype(jnp.float32)
    c_n = c_n / jnp.maximum(jnp.linalg.norm(c_n, axis=1, keepdims=True), 1e-12)

    d_pad = _round_up(D, 128)
    c_pad = _round_up(C, 128)

    if tile_b is None:
        # Big enough to amortize per-grid-step overhead, capped so that the
        # double-buffered x tile stays well inside the scoped VMEM budget.
        vmem_cap_rows = max(256, (8 * 1024 * 1024) // (2 * 2 * d_pad))
        tile_b = min(1024, vmem_cap_rows, _round_up(B, 8))
        tile_b = _round_up(tile_b, 8)
    b_pad = _round_up(B, tile_b)

    # Pre-transposed (D, C), zero-padded, bf16 (halves the dominant DMA bytes).
    ct = (jnp.zeros((d_pad, c_pad), jnp.float32)
          .at[:D, :C].set(c_n.T)).astype(jnp.bfloat16)
    xp = (jnp.zeros((b_pad, d_pad), jnp.float32)
          .at[:B, :D].set(x.astype(jnp.float32))).astype(jnp.bfloat16)
    lp = jnp.zeros((b_pad, 1), jnp.int32).at[:B, 0].set(labels.astype(jnp.int32))

    num_tiles = b_pad // tile_b

    # TODO(synk): margin is a compile-time constant (recompiles if it changes);
    # pass it as an SMEM scalar if a dynamic margin is ever needed.
    kernel = functools.partial(_triplet_center_cosine_kernel,
                               margin=float(margin), batch=B,
                               num_classes=C, tile_b=tile_b)

    cost = pl.CostEstimate(
        flops=2 * b_pad * d_pad * c_pad,
        transcendentals=0,
        bytes_accessed=(b_pad * d_pad * 2          # x (bf16)
                        + d_pad * c_pad * 2        # centers (bf16, resident)
                        + b_pad * 1 * 4            # labels / per-sample out
                        + b_pad * 4))

    per_sample = pl.pallas_call(
        kernel,
        out_shape=jax.ShapeDtypeStruct((b_pad, 1), jnp.float32),
        grid=(num_tiles,),
        in_specs=[
            pl.BlockSpec((tile_b, d_pad), lambda i: (i, 0)),   # x: streamed tiles
            pl.BlockSpec((d_pad, c_pad), lambda i: (0, 0)),    # centers: resident
            pl.BlockSpec((tile_b, 1), lambda i: (i, 0)),       # labels
        ],
        out_specs=pl.BlockSpec((tile_b, 1), lambda i: (i, 0)),
        compiler_params=pltpu.CompilerParams(
            dimension_semantics=("parallel",),       # batch tiles are independent
            vmem_limit_bytes=32 * 1024 * 1024),
        cost_estimate=cost,
    )(xp, ct, lp)

    return jnp.sum(per_sample) / jnp.float32(B)


def _reference(x, centers, labels, margin=1.0):
    # Pure-JAX (f32) reference mirroring the PyTorch loop.
    c_n = centers / jnp.maximum(
        jnp.linalg.norm(centers, axis=1, keepdims=True), 1e-12)
    d = 1.0 - x @ c_n.T
    B, C = d.shape
    pos = d[jnp.arange(B), labels]
    mask = jnp.arange(C)[None, :] == labels[:, None]
    neg = jnp.min(jnp.where(mask, jnp.inf, d), axis=1)
    return jnp.mean(jnp.maximum(pos + margin - neg, 0.0))


if __name__ == "__main__":
    key = jax.random.PRNGKey(0)
    k_x, k_c, k_l = jax.random.split(key, 3)

    batch = 2
    num_classes = 90
    fea_dim = 512
    margin = 1.0

    # Deterministic synthetic parameters / inputs.
    centers = jax.random.normal(k_c, (num_classes, fea_dim), dtype=jnp.float32)
    x = jax.random.normal(k_x, (batch, fea_dim), dtype=jnp.float32)
    x = x / jnp.linalg.norm(x, axis=1, keepdims=True)  # ||x||_2 = 1 per docstring
    labels = jax.random.randint(k_l, (batch,), 0, num_classes, dtype=jnp.int32)

    loss = triplet_center_cosine_loss(x, centers, labels, margin=margin)
    loss = jax.block_until_ready(loss)

    # Kernel runs the matmul with bf16 operands (f32 accumulate), so compare
    # against the f32 reference with a bf16-appropriate tolerance.
    ref = _reference(x, centers, labels, margin=margin)
    assert jnp.allclose(loss, ref, atol=2e-2, rtol=2e-2), (loss, ref)

    print("KERNEL_OK")
</pallas_src>

<mosaic_0001>
module attributes {stable_mosaic.version = 11 : i64} {
  func.func @_triplet_center_cosine_kernel(%arg0: i32, %arg1: memref<8x512xbf16, #tpu.memory_space<vmem>>, %arg2: memref<512x128xbf16, #tpu.memory_space<vmem>>, %arg3: memref<8x1xi32, #tpu.memory_space<vmem>>, %arg4: memref<8x1xf32, #tpu.memory_space<vmem>>) attributes {dimension_semantics = [#tpu.dimension_semantics<parallel>], iteration_bounds = array<i64: 1>, scalar_prefetch = 0 : i64, scratch_operands = 0 : i64, tpu.core_type = #tpu.core_type<tc>, window_params = [{transform_indices = @transform_0, window_bounds = array<i64: 8, 512>}, {pipeline_mode = #tpu.pipeline_mode<synchronous>, transform_indices = @transform_1, window_bounds = array<i64: 512, 128>}, {transform_indices = @transform_2, window_bounds = array<i64: 8, 1>}, {transform_indices = @transform_3, window_bounds = array<i64: 8, 1>}]} {
    %c0 = arith.constant 0 : index
    %c0_0 = arith.constant 0 : index
    %0 = vector.load %arg1[%c0, %c0_0] : memref<8x512xbf16, #tpu.memory_space<vmem>>, vector<8x512xbf16>
    %c0_1 = arith.constant 0 : index
    %c0_2 = arith.constant 0 : index
    %1 = vector.load %arg2[%c0_1, %c0_2] : memref<512x128xbf16, #tpu.memory_space<vmem>>, vector<512x128xbf16>
    %c0_3 = arith.constant 0 : index
    %c0_4 = arith.constant 0 : index
    %2 = vector.load %arg3[%c0_3, %c0_4] : memref<8x1xi32, #tpu.memory_space<vmem>>, vector<8x1xi32>
    %cst = arith.constant dense<0.000000e+00> : vector<8x128xf32>
    %3 = tpu.matmul %0, %1, %cst {dimension_numbers = #tpu.dot_dimension_numbers<[1], [0], [0], [1], [0, 0, 1, 1], [], []>} : vector<8x512xbf16>, vector<512x128xbf16>, vector<8x128xf32> -> vector<8x128xf32>
    %cst_5 = arith.constant 1.000000e+00 : f32
    %4 = vector.broadcast %cst_5 : f32 to vector<8x128xf32>
    %5 = arith.subf %4, %3 : vector<8x128xf32>
    %6 = tpu.iota {dimensions = array<i32: 1>} : vector<8x128xi32>
    %7 = vector.broadcast %2 : vector<8x1xi32> to vector<8x128xi32>
    %8 = arith.cmpi eq, %6, %7 : vector<8x128xi32>
    %c90_i32 = arith.constant 90 : i32
    %9 = vector.broadcast %c90_i32 : i32 to vector<8x128xi32>
    %10 = arith.cmpi sge, %6, %9 : vector<8x128xi32>
    %cst_6 = arith.constant 0.000000e+00 : f32
    %11 = vector.broadcast %cst_6 : f32 to vector<8x128xf32>
    %12 = arith.select %8, %5, %11 : vector<8x128xi1>, vector<8x128xf32>
    %cst_7 = arith.constant dense<0.000000e+00> : vector<8xf32>
    %13 = vector.multi_reduction <add>, %12, %cst_7 [1] : vector<8x128xf32> to vector<8xf32>
    %14 = vector.shape_cast %13 : vector<8xf32> to vector<8x1xf32>
    %15 = arith.ori %8, %10 : vector<8x128xi1>
    %cst_8 = arith.constant 0x7F800000 : f32
    %16 = vector.broadcast %cst_8 : f32 to vector<8x128xf32>
    %17 = arith.select %15, %16, %5 : vector<8x128xi1>, vector<8x128xf32>
    %cst_9 = arith.constant dense<0x7F800000> : vector<8xf32>
    %18 = vector.multi_reduction <minimumf>, %17, %cst_9 [1] : vector<8x128xf32> to vector<8xf32>
    %19 = vector.shape_cast %18 : vector<8xf32> to vector<8x1xf32>
    %cst_10 = arith.constant 1.000000e+00 : f32
    %20 = vector.broadcast %cst_10 : f32 to vector<8x1xf32>
    %21 = arith.addf %14, %20 : vector<8x1xf32>
    %22 = arith.subf %21, %19 : vector<8x1xf32>
    %cst_11 = arith.constant 0.000000e+00 : f32
    %23 = vector.broadcast %cst_11 : f32 to vector<8x1xf32>
    %24 = arith.maximumf %22, %23 : vector<8x1xf32>
    %25 = tpu.iota {dimensions = array<i32: 0>} : vector<8x1xi32>
    %c8_i32 = arith.constant 8 : i32
    %26 = arith.muli %arg0, %c8_i32 : i32
    %27 = vector.broadcast %26 : i32 to vector<8x1xi32>
    %28 = arith.addi %27, %25 : vector<8x1xi32>
    %c2_i32 = arith.constant 2 : i32
    %29 = vector.broadcast %c2_i32 : i32 to vector<8x1xi32>
    %30 = arith.cmpi slt, %28, %29 : vector<8x1xi32>
    %cst_12 = arith.constant 0.000000e+00 : f32
    %31 = vector.broadcast %cst_12 : f32 to vector<8x1xf32>
    %32 = arith.select %30, %24, %31 : vector<8x1xi1>, vector<8x1xf32>
    %c0_13 = arith.constant 0 : index
    %c0_14 = arith.constant 0 : index
    %33 = vector.load %arg4[%c0_13, %c0_14] : memref<8x1xf32, #tpu.memory_space<vmem>>, vector<8x1xf32>
    tpu.vector_store %arg4[%c0_13, %c0_14], %32 {strides = array<i32>} : memref<8x1xf32, #tpu.memory_space<vmem>>, vector<8x1xf32>,
    return
  }
  func.func @transform_0(%arg0: i32) -> (i32, i32) {
    %c0_i32 = arith.constant 0 : i32
    %c0_i32_0 = arith.constant 0 : i32
    return %arg0, %c0_i32 : i32, i32
  }
  func.func @transform_1(%arg0: i32) -> (i32, i32) {
    %c0_i32 = arith.constant 0 : i32
    %c0_i32_0 = arith.constant 0 : i32
    %c0_i32_1 = arith.constant 0 : i32
    return %c0_i32, %c0_i32_0 : i32, i32
  }
  func.func @transform_2(%arg0: i32) -> (i32, i32) {
    %c0_i32 = arith.constant 0 : i32
    %c0_i32_0 = arith.constant 0 : i32
    return %arg0, %c0_i32 : i32, i32
  }
  func.func @transform_3(%arg0: i32) -> (i32, i32) {
    %c0_i32 = arith.constant 0 : i32
    %c0_i32_0 = arith.constant 0 : i32
    return %arg0, %c0_i32 : i32, i32
  }
}

</mosaic_0001>

<bundles_post_ra>
// kernel: tpu_custom_call.1
= control target key start
LH: loop header
LB: loop body
LE: loop exit
PB: predicated region body
PF: predicated region fallthrough
CT: control target
= control target key end

     0   :  { %8 = vsyncpa [#allocation3], 0  ;;  %s657_s0 = inlined_call_operand.hbm [shape: bf16[8,512], index: 0, kind: input, shape index: {}]   ;;  %s658_s1 = inlined_call_operand.hbm [shape: bf16[512,128], index: 1, kind: input, shape index: {}]   ;;  %s659_s2 = inlined_call_operand.vmem [shape: s32[8,1], index: 2, kind: input, shape index: {}]   ;;  %s660_s3 = inlined_call_operand.vmem [shape: f32[8,1], index: 3, kind: output, shape index: {}]  }
   0x1   :  { %s15_s14 = sshll.u32 %s657_s0, 4  ;;  %s16_s14 = int_to_ptr.hbm [resolvable:$true] %s15_s14 }
   0x2   :  { %9 = vsyncpa [#allocation5], 0  ;;  %s620_s15 = smov [#allocation2]   ;;  %s25_s19 = sshll.u32 %s658_s1, 4  ;;  %s26_s19 = int_to_ptr.hbm [resolvable:$true] %s25_s19 }
   0x3   :  { %s17_s16 = sshll.u32 %s620_s15, 4  ;;  %s621_s20 = smov [#allocation4]   ;;  %s18_s16 = int_to_ptr.vmem [resolvable:$true] %s17_s16 }
   0x4   :  { %20 = dma.hbm_to_vmem [thread:$0]  %s16_s14, 256, %s18_s16, [#allocation3]  }
   0x5   :  { %s27_s21 = sshll.u32 %s621_s20, 4  ;;  %s622_s22 = smov 64   ;;  %s28_s21 = int_to_ptr.vmem [resolvable:$true] %s27_s21 }
   0x6   :  { %s623_s23 = smov 4  }
   0x7   :  { %33 = dma.hbm_to_vmem [thread:$0]  %s26_s19, 4096, %s28_s21, [#allocation5], %s622_s22, %s622_s22, %s623_s23  }
   0x8   :  { %616 = dma.done.wait [#allocation3], 256  }
   0x9   :  { %617 = vsyncadd [#allocation3], 4294967040 }
   0xa   :  { %618 = dma.done.wait [#allocation5], 4096  }
   0xb   :  { %619 = vsyncadd [#allocation5], 4294963200  ;;  %v537_v0 = vld [vmem:[#allocation4 + $0x38] sm:$0xff]  ;;  %v536_v4 = vld [vmem:[#allocation4 + $0x30] sm:$0xff]  ;;  %v624_v8 = vmov 0   ;;  %v370_v46 = vlaneseq  ;;  %vm394_vm4 = vcmask 7168  }
   0xc   :  { %v545_v1 = vld [vmem:[#allocation4 + $0x78] sm:$0xff]  ;;  %317 = vmatpush.bf16.msra.mxu0 %v537_v0  ;;  %v544_v5 = vld [vmem:[#allocation4 + $0x70] sm:$0xff]  ;;  %567 = vset.pattern.permute.xlu0 %v624_v8  ;;  %v535_v9 = vld [vmem:[#allocation4 + $0x28] sm:$0xff] }
   0xd   :  { %v553_v2 = vld [vmem:[#allocation4 + $0xb8] sm:$0xff]  ;;  %330 = vmatpush.bf16.msra.mxu1 %v545_v1  ;;  %v552_v6 = vld [vmem:[#allocation4 + $0xb0] sm:$0xff]  ;;  %v543_v10 = vld [vmem:[#allocation4 + $0x68] sm:$0xff]  ;;  %v371_v48 = vand.u32 127, %v370_v46  ;;  %v388_v61 = vshrl.u32 %v370_v46, 7 }
   0xe   :  { %v561_v3 = vld [vmem:[#allocation4 + $0xf8] sm:$0xff]  ;;  %343 = vmatpush.bf16.msra.mxu2 %v553_v2  ;;  %v560_v7 = vld [vmem:[#allocation4 + $0xf0] sm:$0xff]  ;;  %v551_v11 = vld [vmem:[#allocation4 + $0xa8] sm:$0xff] }
   0xf   :  { %356 = vmatpush.bf16.msra.mxu3 %v561_v3  ;;  %v559_v12 = vld [vmem:[#allocation4 + $0xe8] sm:$0xff]  ;;  %v534_v13 = vld [vmem:[#allocation4 + $0x20] sm:$0xff]  ;;  %v110_v17 = vld [vmem:[%s659_s2] sm:$0xff]  ;;  %vm376_vm1 = vcmp.ge.s32.totalorder %v371_v48, 90  ;;  %vm392_vm3 = vcmp.lt.s32.totalorder %v388_v61, 2 }
  0x10   :  { %318 = vmatpush.bf16.msra.mxu0 %v536_v4  ;;  %v542_v14 = vld [vmem:[#allocation4 + $0x60] sm:$0xff]  ;;  %373 = vperm.xlu0 %567, %v110_v17   ;;  %v533_v18 = vld [vmem:[#allocation4 + $0x18] sm:$0xff]  ;;  %v532_v22 = vld [vmem:[#allocation4 + $0x10] sm:$0xff] }
  0x11   :  { %331 = vmatpush.bf16.msra.mxu1 %v544_v5  ;;  %v550_v15 = vld [vmem:[#allocation4 + $0xa0] sm:$0xff]  ;;  %v541_v19 = vld [vmem:[#allocation4 + $0x58] sm:$0xff]  ;;  %v540_v23 = vld [vmem:[#allocation4 + $0x50] sm:$0xff] }
  0x12   :  { %344 = vmatpush.bf16.msra.mxu2 %v552_v6  ;;  %v558_v16 = vld [vmem:[#allocation4 + $0xe0] sm:$0xff]  ;;  %v549_v20 = vld [vmem:[#allocation4 + $0x98] sm:$0xff]  ;;  %v548_v24 = vld [vmem:[#allocation4 + $0x90] sm:$0xff] }
  0x13   :  { %357 = vmatpush.bf16.msra.mxu3 %v560_v7  ;;  %v557_v21 = vld [vmem:[#allocation4 + $0xd8] sm:$0xff]  ;;  %v556_v25 = vld [vmem:[#allocation4 + $0xd0] sm:$0xff]  ;;  %v531_v26 = vld [vmem:[#allocation4 + $0x8] sm:$0xff] }
  0x14   :  { %319 = vmatpush.bf16.msra.mxu0 %v535_v9  ;;  %v539_v27 = vld [vmem:[#allocation4 + $0x48] sm:$0xff]  ;;  %v44_v28 = vld [vmem:[#allocation2] sm:$0xff]  ;;  %v45_v31 = vld [vmem:[#allocation2 + $0x8] sm:$0xff] }
  0x15   :  { %332 = vmatpush.bf16.msra.mxu1 %v543_v10  ;;  %v547_v29 = vld [vmem:[#allocation4 + $0x88] sm:$0xff]  ;;  %v113_v32 = vunpack.c.l.b16 %v44_v28  ;;  %v114_v33 = vunpack.c.h.b16 %v44_v28  ;;  %v530_v34 = vld [vmem:[#allocation4] sm:$0xff]  ;;  %v115_v36 = vunpack.c.l.b16 %v45_v31  ;;  %v116_v37 = vunpack.c.h.b16 %v45_v31 }
  0x16   :  { %345 = vmatpush.bf16.msra.mxu2 %v551_v11  ;;  %v555_v30 = vld [vmem:[#allocation4 + $0xc8] sm:$0xff]  ;;  %v538_v35 = vld [vmem:[#allocation4 + $0x40] sm:$0xff] }
  0x17   :  { %358 = vmatpush.bf16.msra.mxu3 %v559_v12  ;;  %v546_v38 = vld [vmem:[#allocation4 + $0x80] sm:$0xff]  ;;  %v117_v40 = vpack.c.b16 %v113_v32, %v113_v32  ;;  %v118_v41 = vpack.c.b16 %v114_v33, %v114_v33  ;;  %v119_v42 = vpack.c.b16 %v115_v36, %v115_v36  ;;  %v120_v43 = vpack.c.b16 %v116_v37, %v116_v37 }
  0x18   :  { %320 = vmatpush.bf16.msra.mxu0 %v534_v13  ;;  %v554_v39 = vld [vmem:[#allocation4 + $0xc0] sm:$0xff] }
  0x19   :  { %333 = vmatpush.bf16.msra.mxu1 %v542_v14 }
  0x1a   :  { %346 = vmatpush.bf16.msra.mxu2 %v550_v15 }
  0x1b   :  { %359 = vmatpush.bf16.msra.mxu3 %v558_v16 }
  0x1c   :  { %321 = vmatpush.bf16.msra.mxu0 %v533_v18 }
  0x1d   :  { %334 = vmatpush.bf16.msra.mxu1 %v541_v19 }
  0x1e   :  { %347 = vmatpush.bf16.msra.mxu2 %v549_v20 }
  0x1f   :  { %360 = vmatpush.bf16.msra.mxu3 %v557_v21 }
  0x20   :  { %322 = vmatpush.bf16.msra.mxu0 %v532_v22 }
  0x21   :  { %335 = vmatpush.bf16.msra.mxu1 %v540_v23 }
  0x22   :  { %348 = vmatpush.bf16.msra.mxu2 %v548_v24 }
  0x23   :  { %361 = vmatpush.bf16.msra.mxu3 %v556_v25 }
  0x24   :  { %323 = vmatpush.bf16.msra.mxu0 %v531_v26 }
  0x25   :  { %336 = vmatpush.bf16.msra.mxu1 %v539_v27 }
  0x26   :  { %349 = vmatpush.bf16.msra.mxu2 %v547_v29 }
  0x27   :  { %362 = vmatpush.bf16.msra.mxu3 %v555_v30 }
  0x28   :  { %324 = vmatpush.bf16.msra.mxu0 %v530_v34 }
  0x29   :  { %337 = vmatpush.bf16.msra.mxu1 %v538_v35 }
  0x2a   :  { %350 = vmatpush.bf16.msra.mxu2 %v546_v38 }
  0x2b   :  { %363 = vmatpush.bf16.msra.mxu3 %v554_v39  ;;  %325 = vmatmul.bf16.vlgmr.msra.gmra.mxu0 %v117_v40 }
  0x2c   :  { %338 = vmatmul.bf16.vlgmr.msra.gmra.mxu1 %v118_v41 }
  0x2d   :  { %351 = vmatmul.bf16.vlgmr.msra.gmra.mxu2 %v119_v42 }
  0x2e   :  { %364 = vmatmul.bf16.vlgmr.msra.gmra.mxu3 %v120_v43 }
  0x82   :  { %v374_v49 = vpop.permute.xlu0 %373 }
  0x83   :  { %vm375_vm0 = vcmp.eq.s32.totalorder %v371_v48, %v374_v49 }
  0x84   :  { %vm380_vm2 = vmor %vm375_vm0, %vm376_vm1 }
  0xa8   :  { %v326_v44 = vpop.f32.mrf.mxu0 }
  0xa9   :  { %v339_v45 = vpop.f32.mrf.mxu1 }
  0xaa   :  { %v340_v47 = vadd.f32 %v339_v45, %v326_v44 }
  0xb0   :  { %v352_v50 = vpop.f32.mrf.mxu2  ;;  %v328_v53 = vpop.f32.mrf.mxu0 }
  0xb1   :  { %v365_v51 = vpop.f32.mrf.mxu3  ;;  %v353_v52 = vadd.f32 %v352_v50, %v340_v47  ;;  %v341_v54 = vpop.f32.mrf.mxu1 }
  0xb3   :  { %v366_v55 = vadd.f32 %v365_v51, %v353_v52 }
  0xb5   :  { %v369_v56 = vsub.f32 1.0, %v366_v55 }
  0xb7   :  { %v381_v57 = vsel %vm380_vm2, inf, %v369_v56  ;;  %v377_v58 = vsel %vm375_vm0, %v369_v56, 0.0 }
  0xb8   :  { %v354_v59 = vpop.f32.mrf.mxu2  ;;  %382 = vmin.xlane.f32.xlu1 %v381_v57  ;;  %378 = vadd.xlane.f32.xlu0 %v377_v58 }
  0xb9   :  { %v367_v60 = vpop.f32.mrf.mxu3 }
 0x12b   :  { %v379_v62 = vpop.xlane.xlu0 %378  ;;  %v383_v0 = vpop.xlane.xlu1 %382 }
 0x12c   :  { %v384_v63 = vadd.f32 1.0, %v379_v62 }
 0x12e   :  { %v385_v1 = vsub.f32 %v384_v63, %v383_v0 }
 0x130   :  { %v386_v2 = vmax.f32 %v385_v1, 0.0 }
 0x132   :  { %v393_v3 = vsel %vm392_vm3, %v386_v2, 0.0 }
 0x133   :  { %395 = vst.msk [vmem:[%s660_s3] sm:$0xff] %vm394_vm4, %v393_v3 }
 0x134   :  { %400 = vsyncpa [#allocation3], 1 }
 0x135   :  { %401 = vsyncpa [#allocation5], 1 }

</bundles_post_ra>
